<compile_context>
chip_gen: v7x
topology: tpu7x:2x2x1
jax: 0.10.0
libtpu: 0.0.40
codegen_flags: <defaults>
</compile_context>

<pallas_src>
import functools
import math

import numpy as np
import jax
import jax.numpy as jnp
from jax.experimental import pallas as pl
from jax.experimental.pallas import tpu as pltpu

WINDOW_SIZE = 11
SIGMA = 1.5
C1 = 0.01 ** 2
C2 = 0.03 ** 2


def _gaussian_1d(window_size: int, sigma: float) -> np.ndarray:
    """1-D Gaussian, identical to SSIM.gaussian()."""
    g = np.array(
        [math.exp(-((x - window_size // 2) ** 2) / float(2 * sigma ** 2))
         for x in range(window_size)],
        dtype=np.float64,
    )
    return (g / g.sum()).astype(np.float32)


def _conv_toeplitz(n: int, g: np.ndarray) -> np.ndarray:
    """T such that (T @ x)[i] = sum_t g[t] * x[i + t - pad], zero outside [0,n).

    This is exactly a 'same' zero-padded 1-D cross-correlation with g.
    """
    ws = g.shape[0]
    pad = ws // 2
    T = np.zeros((n, n), np.float32)
    for i in range(n):
        for t in range(ws):
            j = i + t - pad
            if 0 <= j < n:
                T[i, j] = g[t]
    return T


def _ssim_block_kernel(i1_ref, i2_ref, th_ref, twt_ref, out_ref, *, Gb, H, W):
    """One grid step = Gb (batch, channel) planes, flattened to (Gb*H, W).

    i1_ref / i2_ref : (Gb*H, W) f32 image planes (VMEM)
    th_ref          : (H, H)  vertical-pass Toeplitz matrix (left multiply)
    twt_ref         : (W, W)  horizontal-pass Toeplitz matrix (right multiply)
    out_ref         : (Gb, 1, 1) f32 — per-plane sum of the SSIM map.
    """
    i1 = i1_ref[...]
    i2 = i2_ref[...]
    th = th_ref[...]
    twt = twt_ref[...]

    # Horizontal conv pass: one MXU matmul per quantity, all Gb planes at once.
    def hpass(x):
        return jnp.dot(x, twt, preferred_element_type=jnp.float32)

    h1 = hpass(i1)
    h2 = hpass(i2)
    h11 = hpass(i1 * i1)
    h22 = hpass(i2 * i2)
    h12 = hpass(i1 * i2)

    # Vertical conv pass + SSIM elementwise math per plane (Gb is small, static).
    for g in range(Gb):
        r = g * H

        def vpass(x, r=r):
            return jnp.dot(th, x[r:r + H, :], preferred_element_type=jnp.float32)

        mu1 = vpass(h1)
        mu2 = vpass(h2)
        m11 = vpass(h11)
        m22 = vpass(h22)
        m12 = vpass(h12)

        mu1_sq = mu1 * mu1
        mu2_sq = mu2 * mu2
        mu1_mu2 = mu1 * mu2
        sigma1_sq = m11 - mu1_sq
        sigma2_sq = m22 - mu2_sq
        sigma12 = m12 - mu1_mu2

        ssim_map = ((2.0 * mu1_mu2 + C1) * (2.0 * sigma12 + C2)) / (
            (mu1_sq + mu2_sq + C1) * (sigma1_sq + sigma2_sq + C2))

        row_sum = jnp.sum(ssim_map, axis=1, keepdims=True)     # (H, 1)
        out_ref[g] = jnp.sum(row_sum, axis=0, keepdims=True)   # (1, 1)


def _pick_plane_block(G, H, W, max_block_bytes=512 * 1024, max_planes=8):
    """Planes per grid step: fit a VMEM budget, keep sublane alignment,
    and prefer >= 2 grid steps so v7x's two TensorCores both get work."""
    plane_bytes = H * W * 4
    cap = max(1, min(max_planes, max_block_bytes // max(plane_bytes, 1)))
    legal = [d for d in range(1, G + 1)
             if G % d == 0 and (((d * H) % 8 == 0) or d == G)]
    in_cap = [d for d in legal if d <= cap]
    if not in_cap:
        return min(legal)
    multi_step = [d for d in in_cap if G // d >= 2]
    return max(multi_step) if multi_step else max(in_cap)


def ssim_pallas(img1, img2, window_size=WINDOW_SIZE, size_average=True):
    """Equivalent of SSIM(window_size, size_average)(img1, img2) for NCHW f32."""
    N, C, H, W = img1.shape
    G = N * C

    g1d = _gaussian_1d(window_size, SIGMA)
    th = jnp.asarray(_conv_toeplitz(H, g1d))       # (H, H) vertical pass
    twt = jnp.asarray(_conv_toeplitz(W, g1d).T)    # (W, W) horizontal pass

    Gb = _pick_plane_block(G, H, W)
    num_blocks = G // Gb

    # Flatten planes to (G*H, W); no padded HBM copy (padding is in the
    # Toeplitz matrices), and the lane dim stays exactly W.
    i1 = img1.astype(jnp.float32).reshape(G * H, W)
    i2 = img2.astype(jnp.float32).reshape(G * H, W)

    kernel = functools.partial(_ssim_block_kernel, Gb=Gb, H=H, W=W)

    plane_sums = pl.pallas_call(
        kernel,
        out_shape=jax.ShapeDtypeStruct((G, 1, 1), jnp.float32),
        grid=(num_blocks,),
        in_specs=[
            pl.BlockSpec((Gb * H, W), lambda g: (g, 0)),
            pl.BlockSpec((Gb * H, W), lambda g: (g, 0)),
            pl.BlockSpec((H, H), lambda g: (0, 0)),
            pl.BlockSpec((W, W), lambda g: (0, 0)),
        ],
        out_specs=pl.BlockSpec((Gb, 1, 1), lambda g: (g, 0, 0)),
        compiler_params=pltpu.CompilerParams(
            dimension_semantics=("parallel",),
            vmem_limit_bytes=32 * 1024 * 1024),
    )(i1, i2, th, twt)

    plane_sums = plane_sums.reshape(G)                  # per-plane sums over H*W
    if size_average:
        return jnp.sum(plane_sums) / (G * H * W)        # scalar mean over all
    # size_average=False: mean over (C, H, W) per batch element -> (N,)
    return plane_sums.reshape(N, C).sum(axis=1) / (C * H * W)


def _ssim_reference(img1, img2, window_size=WINDOW_SIZE, size_average=True):
    """Pure-JAX reference mirroring the PyTorch module (grouped conv2d)."""
    N, C, H, W = img1.shape
    pad = window_size // 2
    g1d = _gaussian_1d(window_size, SIGMA)
    w2d = jnp.asarray(np.outer(g1d, g1d).astype(np.float32))
    win = jnp.broadcast_to(w2d, (C, 1, window_size, window_size))

    def conv(x):
        return jax.lax.conv_general_dilated(
            x, win, window_strides=(1, 1),
            padding=[(pad, pad), (pad, pad)],
            dimension_numbers=("NCHW", "OIHW", "NCHW"),
            feature_group_count=C)

    mu1 = conv(img1)
    mu2 = conv(img2)
    mu1_sq, mu2_sq, mu1_mu2 = mu1 * mu1, mu2 * mu2, mu1 * mu2
    sigma1_sq = conv(img1 * img1) - mu1_sq
    sigma2_sq = conv(img2 * img2) - mu2_sq
    sigma12 = conv(img1 * img2) - mu1_mu2
    ssim_map = ((2 * mu1_mu2 + C1) * (2 * sigma12 + C2)) / (
        (mu1_sq + mu2_sq + C1) * (sigma1_sq + sigma2_sq + C2))
    if size_average:
        return ssim_map.mean()
    return ssim_map.mean(axis=(1, 2, 3))


if __name__ == "__main__":
    key = jax.random.PRNGKey(0)
    k1, k2 = jax.random.split(key)
    img1 = jax.random.uniform(k1, (2, 4, 16, 16), dtype=jnp.float32)
    img2 = jax.random.uniform(k2, (2, 4, 16, 16), dtype=jnp.float32)

    out = ssim_pallas(img1, img2)
    jax.block_until_ready(out)
    ref = _ssim_reference(img1, img2)
    assert jnp.allclose(out, ref, rtol=1e-4, atol=1e-4), (out, ref)

    out_na = ssim_pallas(img1, img2, size_average=False)
    jax.block_until_ready(out_na)
    ref_na = _ssim_reference(img1, img2, size_average=False)
    assert jnp.allclose(out_na, ref_na, rtol=1e-4, atol=1e-4), (out_na, ref_na)

    print("KERNEL_OK")
</pallas_src>

<mosaic_0001>
module attributes {stable_mosaic.version = 11 : i64} {
  func.func @_ssim_block_kernel(%arg0: i32, %arg1: memref<64x16xf32, #tpu.memory_space<vmem>>, %arg2: memref<64x16xf32, #tpu.memory_space<vmem>>, %arg3: memref<16x16xf32, #tpu.memory_space<vmem>>, %arg4: memref<16x16xf32, #tpu.memory_space<vmem>>, %arg5: memref<4x1x1xf32, #tpu.memory_space<vmem>>) attributes {dimension_semantics = [#tpu.dimension_semantics<parallel>], iteration_bounds = array<i64: 2>, scalar_prefetch = 0 : i64, scratch_operands = 0 : i64, tpu.core_type = #tpu.core_type<tc>, window_params = [{transform_indices = @transform_0, window_bounds = array<i64: 64, 16>}, {transform_indices = @transform_1, window_bounds = array<i64: 64, 16>}, {pipeline_mode = #tpu.pipeline_mode<synchronous>, transform_indices = @transform_2, window_bounds = array<i64: 16, 16>}, {pipeline_mode = #tpu.pipeline_mode<synchronous>, transform_indices = @transform_3, window_bounds = array<i64: 16, 16>}, {transform_indices = @transform_4, window_bounds = array<i64: 4, 1, 1>}]} {
    %c0 = arith.constant 0 : index
    %c0_0 = arith.constant 0 : index
    %0 = vector.load %arg1[%c0, %c0_0] : memref<64x16xf32, #tpu.memory_space<vmem>>, vector<64x16xf32>
    %c0_1 = arith.constant 0 : index
    %c0_2 = arith.constant 0 : index
    %1 = vector.load %arg2[%c0_1, %c0_2] : memref<64x16xf32, #tpu.memory_space<vmem>>, vector<64x16xf32>
    %c0_3 = arith.constant 0 : index
    %c0_4 = arith.constant 0 : index
    %2 = vector.load %arg3[%c0_3, %c0_4] : memref<16x16xf32, #tpu.memory_space<vmem>>, vector<16x16xf32>
    %c0_5 = arith.constant 0 : index
    %c0_6 = arith.constant 0 : index
    %3 = vector.load %arg4[%c0_5, %c0_6] : memref<16x16xf32, #tpu.memory_space<vmem>>, vector<16x16xf32>
    %cst = arith.constant dense<0.000000e+00> : vector<64x16xf32>
    %4 = tpu.matmul %0, %3, %cst {dimension_numbers = #tpu.dot_dimension_numbers<[1], [0], [0], [1], [0, 0, 1, 1], [], []>} : vector<64x16xf32>, vector<16x16xf32>, vector<64x16xf32> -> vector<64x16xf32>
    %cst_7 = arith.constant dense<0.000000e+00> : vector<64x16xf32>
    %5 = tpu.matmul %1, %3, %cst_7 {dimension_numbers = #tpu.dot_dimension_numbers<[1], [0], [0], [1], [0, 0, 1, 1], [], []>} : vector<64x16xf32>, vector<16x16xf32>, vector<64x16xf32> -> vector<64x16xf32>
    %6 = arith.mulf %0, %0 : vector<64x16xf32>
    %cst_8 = arith.constant dense<0.000000e+00> : vector<64x16xf32>
    %7 = tpu.matmul %6, %3, %cst_8 {dimension_numbers = #tpu.dot_dimension_numbers<[1], [0], [0], [1], [0, 0, 1, 1], [], []>} : vector<64x16xf32>, vector<16x16xf32>, vector<64x16xf32> -> vector<64x16xf32>
    %8 = arith.mulf %1, %1 : vector<64x16xf32>
    %cst_9 = arith.constant dense<0.000000e+00> : vector<64x16xf32>
    %9 = tpu.matmul %8, %3, %cst_9 {dimension_numbers = #tpu.dot_dimension_numbers<[1], [0], [0], [1], [0, 0, 1, 1], [], []>} : vector<64x16xf32>, vector<16x16xf32>, vector<64x16xf32> -> vector<64x16xf32>
    %10 = arith.mulf %0, %1 : vector<64x16xf32>
    %cst_10 = arith.constant dense<0.000000e+00> : vector<64x16xf32>
    %11 = tpu.matmul %10, %3, %cst_10 {dimension_numbers = #tpu.dot_dimension_numbers<[1], [0], [0], [1], [0, 0, 1, 1], [], []>} : vector<64x16xf32>, vector<16x16xf32>, vector<64x16xf32> -> vector<64x16xf32>
    %12 = vector.extract_strided_slice %4 {offsets = [0, 0], sizes = [16, 16], strides = [1, 1]} : vector<64x16xf32> to vector<16x16xf32>
    %cst_11 = arith.constant dense<0.000000e+00> : vector<16x16xf32>
    %13 = tpu.matmul %2, %12, %cst_11 {dimension_numbers = #tpu.dot_dimension_numbers<[1], [0], [0], [1], [0, 0, 1, 1], [], []>} : vector<16x16xf32>, vector<16x16xf32>, vector<16x16xf32> -> vector<16x16xf32>
    %14 = vector.extract_strided_slice %5 {offsets = [0, 0], sizes = [16, 16], strides = [1, 1]} : vector<64x16xf32> to vector<16x16xf32>
    %cst_12 = arith.constant dense<0.000000e+00> : vector<16x16xf32>
    %15 = tpu.matmul %2, %14, %cst_12 {dimension_numbers = #tpu.dot_dimension_numbers<[1], [0], [0], [1], [0, 0, 1, 1], [], []>} : vector<16x16xf32>, vector<16x16xf32>, vector<16x16xf32> -> vector<16x16xf32>
    %16 = vector.extract_strided_slice %7 {offsets = [0, 0], sizes = [16, 16], strides = [1, 1]} : vector<64x16xf32> to vector<16x16xf32>
    %cst_13 = arith.constant dense<0.000000e+00> : vector<16x16xf32>
    %17 = tpu.matmul %2, %16, %cst_13 {dimension_numbers = #tpu.dot_dimension_numbers<[1], [0], [0], [1], [0, 0, 1, 1], [], []>} : vector<16x16xf32>, vector<16x16xf32>, vector<16x16xf32> -> vector<16x16xf32>
    %18 = vector.extract_strided_slice %9 {offsets = [0, 0], sizes = [16, 16], strides = [1, 1]} : vector<64x16xf32> to vector<16x16xf32>
    %cst_14 = arith.constant dense<0.000000e+00> : vector<16x16xf32>
    %19 = tpu.matmul %2, %18, %cst_14 {dimension_numbers = #tpu.dot_dimension_numbers<[1], [0], [0], [1], [0, 0, 1, 1], [], []>} : vector<16x16xf32>, vector<16x16xf32>, vector<16x16xf32> -> vector<16x16xf32>
    %20 = vector.extract_strided_slice %11 {offsets = [0, 0], sizes = [16, 16], strides = [1, 1]} : vector<64x16xf32> to vector<16x16xf32>
    %cst_15 = arith.constant dense<0.000000e+00> : vector<16x16xf32>
    %21 = tpu.matmul %2, %20, %cst_15 {dimension_numbers = #tpu.dot_dimension_numbers<[1], [0], [0], [1], [0, 0, 1, 1], [], []>} : vector<16x16xf32>, vector<16x16xf32>, vector<16x16xf32> -> vector<16x16xf32>
    %22 = arith.mulf %13, %13 : vector<16x16xf32>
    %23 = arith.mulf %15, %15 : vector<16x16xf32>
    %24 = arith.mulf %13, %15 : vector<16x16xf32>
    %25 = arith.subf %17, %22 : vector<16x16xf32>
    %26 = arith.subf %19, %23 : vector<16x16xf32>
    %27 = arith.subf %21, %24 : vector<16x16xf32>
    %cst_16 = arith.constant 2.000000e+00 : f32
    %28 = vector.broadcast %cst_16 : f32 to vector<16x16xf32>
    %29 = arith.mulf %28, %24 : vector<16x16xf32>
    %cst_17 = arith.constant 9.99999974E-5 : f32
    %30 = vector.broadcast %cst_17 : f32 to vector<16x16xf32>
    %31 = arith.addf %29, %30 : vector<16x16xf32>
    %cst_18 = arith.constant 2.000000e+00 : f32
    %32 = vector.broadcast %cst_18 : f32 to vector<16x16xf32>
    %33 = arith.mulf %32, %27 : vector<16x16xf32>
    %cst_19 = arith.constant 8.99999984E-4 : f32
    %34 = vector.broadcast %cst_19 : f32 to vector<16x16xf32>
    %35 = arith.addf %33, %34 : vector<16x16xf32>
    %36 = arith.mulf %31, %35 : vector<16x16xf32>
    %37 = arith.addf %22, %23 : vector<16x16xf32>
    %cst_20 = arith.constant 9.99999974E-5 : f32
    %38 = vector.broadcast %cst_20 : f32 to vector<16x16xf32>
    %39 = arith.addf %37, %38 : vector<16x16xf32>
    %40 = arith.addf %25, %26 : vector<16x16xf32>
    %cst_21 = arith.constant 8.99999984E-4 : f32
    %41 = vector.broadcast %cst_21 : f32 to vector<16x16xf32>
    %42 = arith.addf %40, %41 : vector<16x16xf32>
    %43 = arith.mulf %39, %42 : vector<16x16xf32>
    %44 = arith.divf %36, %43 : vector<16x16xf32>
    %cst_22 = arith.constant dense<0.000000e+00> : vector<16xf32>
    %45 = vector.multi_reduction <add>, %44, %cst_22 [1] : vector<16x16xf32> to vector<16xf32>
    %46 = vector.shape_cast %45 : vector<16xf32> to vector<16x1xf32>
    %cst_23 = arith.constant dense<0.000000e+00> : vector<1xf32>
    %47 = vector.multi_reduction <add>, %46, %cst_23 [0] : vector<16x1xf32> to vector<1xf32>
    %48 = vector.shape_cast %47 : vector<1xf32> to vector<1x1xf32>
    %c0_24 = arith.constant 0 : index
    %c0_25 = arith.constant 0 : index
    %c0_26 = arith.constant 0 : index
    %49 = vector.load %arg5[%c0_24, %c0_25, %c0_26] : memref<4x1x1xf32, #tpu.memory_space<vmem>>, vector<1x1x1xf32>
    %50 = vector.shape_cast %49 : vector<1x1x1xf32> to vector<1x1xf32>
    %51 = vector.shape_cast %48 : vector<1x1xf32> to vector<1x1x1xf32>
    tpu.vector_store %arg5[%c0_24, %c0_25, %c0_26], %51 {strides = array<i32>} : memref<4x1x1xf32, #tpu.memory_space<vmem>>, vector<1x1x1xf32>,
    %52 = vector.extract_strided_slice %4 {offsets = [16, 0], sizes = [16, 16], strides = [1, 1]} : vector<64x16xf32> to vector<16x16xf32>
    %cst_27 = arith.constant dense<0.000000e+00> : vector<16x16xf32>
    %53 = tpu.matmul %2, %52, %cst_27 {dimension_numbers = #tpu.dot_dimension_numbers<[1], [0], [0], [1], [0, 0, 1, 1], [], []>} : vector<16x16xf32>, vector<16x16xf32>, vector<16x16xf32> -> vector<16x16xf32>
    %54 = vector.extract_strided_slice %5 {offsets = [16, 0], sizes = [16, 16], strides = [1, 1]} : vector<64x16xf32> to vector<16x16xf32>
    %cst_28 = arith.constant dense<0.000000e+00> : vector<16x16xf32>
    %55 = tpu.matmul %2, %54, %cst_28 {dimension_numbers = #tpu.dot_dimension_numbers<[1], [0], [0], [1], [0, 0, 1, 1], [], []>} : vector<16x16xf32>, vector<16x16xf32>, vector<16x16xf32> -> vector<16x16xf32>
    %56 = vector.extract_strided_slice %7 {offsets = [16, 0], sizes = [16, 16], strides = [1, 1]} : vector<64x16xf32> to vector<16x16xf32>
    %cst_29 = arith.constant dense<0.000000e+00> : vector<16x16xf32>
    %57 = tpu.matmul %2, %56, %cst_29 {dimension_numbers = #tpu.dot_dimension_numbers<[1], [0], [0], [1], [0, 0, 1, 1], [], []>} : vector<16x16xf32>, vector<16x16xf32>, vector<16x16xf32> -> vector<16x16xf32>
    %58 = vector.extract_strided_slice %9 {offsets = [16, 0], sizes = [16, 16], strides = [1, 1]} : vector<64x16xf32> to vector<16x16xf32>
    %cst_30 = arith.constant dense<0.000000e+00> : vector<16x16xf32>
    %59 = tpu.matmul %2, %58, %cst_30 {dimension_numbers = #tpu.dot_dimension_numbers<[1], [0], [0], [1], [0, 0, 1, 1], [], []>} : vector<16x16xf32>, vector<16x16xf32>, vector<16x16xf32> -> vector<16x16xf32>
    %60 = vector.extract_strided_slice %11 {offsets = [16, 0], sizes = [16, 16], strides = [1, 1]} : vector<64x16xf32> to vector<16x16xf32>
    %cst_31 = arith.constant dense<0.000000e+00> : vector<16x16xf32>
    %61 = tpu.matmul %2, %60, %cst_31 {dimension_numbers = #tpu.dot_dimension_numbers<[1], [0], [0], [1], [0, 0, 1, 1], [], []>} : vector<16x16xf32>, vector<16x16xf32>, vector<16x16xf32> -> vector<16x16xf32>
    %62 = arith.mulf %53, %53 : vector<16x16xf32>
    %63 = arith.mulf %55, %55 : vector<16x16xf32>
    %64 = arith.mulf %53, %55 : vector<16x16xf32>
    %65 = arith.subf %57, %62 : vector<16x16xf32>
    %66 = arith.subf %59, %63 : vector<16x16xf32>
    %67 = arith.subf %61, %64 : vector<16x16xf32>
    %cst_32 = arith.constant 2.000000e+00 : f32
    %68 = vector.broadcast %cst_32 : f32 to vector<16x16xf32>
    %69 = arith.mulf %68, %64 : vector<16x16xf32>
    %cst_33 = arith.constant 9.99999974E-5 : f32
    %70 = vector.broadcast %cst_33 : f32 to vector<16x16xf32>
    %71 = arith.addf %69, %70 : vector<16x16xf32>
    %cst_34 = arith.constant 2.000000e+00 : f32
    %72 = vector.broadcast %cst_34 : f32 to vector<16x16xf32>
    %73 = arith.mulf %72, %67 : vector<16x16xf32>
    %cst_35 = arith.constant 8.99999984E-4 : f32
    %74 = vector.broadcast %cst_35 : f32 to vector<16x16xf32>
    %75 = arith.addf %73, %74 : vector<16x16xf32>
    %76 = arith.mulf %71, %75 : vector<16x16xf32>
    %77 = arith.addf %62, %63 : vector<16x16xf32>
    %cst_36 = arith.constant 9.99999974E-5 : f32
    %78 = vector.broadcast %cst_36 : f32 to vector<16x16xf32>
    %79 = arith.addf %77, %78 : vector<16x16xf32>
    %80 = arith.addf %65, %66 : vector<16x16xf32>
    %cst_37 = arith.constant 8.99999984E-4 : f32
    %81 = vector.broadcast %cst_37 : f32 to vector<16x16xf32>
    %82 = arith.addf %80, %81 : vector<16x16xf32>
    %83 = arith.mulf %79, %82 : vector<16x16xf32>
    %84 = arith.divf %76, %83 : vector<16x16xf32>
    %cst_38 = arith.constant dense<0.000000e+00> : vector<16xf32>
    %85 = vector.multi_reduction <add>, %84, %cst_38 [1] : vector<16x16xf32> to vector<16xf32>
    %86 = vector.shape_cast %85 : vector<16xf32> to vector<16x1xf32>
    %cst_39 = arith.constant dense<0.000000e+00> : vector<1xf32>
    %87 = vector.multi_reduction <add>, %86, %cst_39 [0] : vector<16x1xf32> to vector<1xf32>
    %88 = vector.shape_cast %87 : vector<1xf32> to vector<1x1xf32>
    %c1 = arith.constant 1 : index
    %c0_40 = arith.constant 0 : index
    %c0_41 = arith.constant 0 : index
    %89 = vector.load %arg5[%c1, %c0_40, %c0_41] : memref<4x1x1xf32, #tpu.memory_space<vmem>>, vector<1x1x1xf32>
    %90 = vector.shape_cast %89 : vector<1x1x1xf32> to vector<1x1xf32>
    %91 = vector.shape_cast %88 : vector<1x1xf32> to vector<1x1x1xf32>
    tpu.vector_store %arg5[%c1, %c0_40, %c0_41], %91 {strides = array<i32>} : memref<4x1x1xf32, #tpu.memory_space<vmem>>, vector<1x1x1xf32>,
    %92 = vector.extract_strided_slice %4 {offsets = [32, 0], sizes = [16, 16], strides = [1, 1]} : vector<64x16xf32> to vector<16x16xf32>
    %cst_42 = arith.constant dense<0.000000e+00> : vector<16x16xf32>
    %93 = tpu.matmul %2, %92, %cst_42 {dimension_numbers = #tpu.dot_dimension_numbers<[1], [0], [0], [1], [0, 0, 1, 1], [], []>} : vector<16x16xf32>, vector<16x16xf32>, vector<16x16xf32> -> vector<16x16xf32>
    %94 = vector.extract_strided_slice %5 {offsets = [32, 0], sizes = [16, 16], strides = [1, 1]} : vector<64x16xf32> to vector<16x16xf32>
    %cst_43 = arith.constant dense<0.000000e+00> : vector<16x16xf32>
    %95 = tpu.matmul %2, %94, %cst_43 {dimension_numbers = #tpu.dot_dimension_numbers<[1], [0], [0], [1], [0, 0, 1, 1], [], []>} : vector<16x16xf32>, vector<16x16xf32>, vector<16x16xf32> -> vector<16x16xf32>
    %96 = vector.extract_strided_slice %7 {offsets = [32, 0], sizes = [16, 16], strides = [1, 1]} : vector<64x16xf32> to vector<16x16xf32>
    %cst_44 = arith.constant dense<0.000000e+00> : vector<16x16xf32>
    %97 = tpu.matmul %2, %96, %cst_44 {dimension_numbers = #tpu.dot_dimension_numbers<[1], [0], [0], [1], [0, 0, 1, 1], [], []>} : vector<16x16xf32>, vector<16x16xf32>, vector<16x16xf32> -> vector<16x16xf32>
    %98 = vector.extract_strided_slice %9 {offsets = [32, 0], sizes = [16, 16], strides = [1, 1]} : vector<64x16xf32> to vector<16x16xf32>
    %cst_45 = arith.constant dense<0.000000e+00> : vector<16x16xf32>
    %99 = tpu.matmul %2, %98, %cst_45 {dimension_numbers = #tpu.dot_dimension_numbers<[1], [0], [0], [1], [0, 0, 1, 1], [], []>} : vector<16x16xf32>, vector<16x16xf32>, vector<16x16xf32> -> vector<16x16xf32>
    %100 = vector.extract_strided_slice %11 {offsets = [32, 0], sizes = [16, 16], strides = [1, 1]} : vector<64x16xf32> to vector<16x16xf32>
    %cst_46 = arith.constant dense<0.000000e+00> : vector<16x16xf32>
    %101 = tpu.matmul %2, %100, %cst_46 {dimension_numbers = #tpu.dot_dimension_numbers<[1], [0], [0], [1], [0, 0, 1, 1], [], []>} : vector<16x16xf32>, vector<16x16xf32>, vector<16x16xf32> -> vector<16x16xf32>
    %102 = arith.mulf %93, %93 : vector<16x16xf32>
    %103 = arith.mulf %95, %95 : vector<16x16xf32>
    %104 = arith.mulf %93, %95 : vector<16x16xf32>
    %105 = arith.subf %97, %102 : vector<16x16xf32>
    %106 = arith.subf %99, %103 : vector<16x16xf32>
    %107 = arith.subf %101, %104 : vector<16x16xf32>
    %cst_47 = arith.constant 2.000000e+00 : f32
    %108 = vector.broadcast %cst_47 : f32 to vector<16x16xf32>
    %109 = arith.mulf %108, %104 : vector<16x16xf32>
    %cst_48 = arith.constant 9.99999974E-5 : f32
    %110 = vector.broadcast %cst_48 : f32 to vector<16x16xf32>
    %111 = arith.addf %109, %110 : vector<16x16xf32>
    %cst_49 = arith.constant 2.000000e+00 : f32
    %112 = vector.broadcast %cst_49 : f32 to vector<16x16xf32>
    %113 = arith.mulf %112, %107 : vector<16x16xf32>
    %cst_50 = arith.constant 8.99999984E-4 : f32
    %114 = vector.broadcast %cst_50 : f32 to vector<16x16xf32>
    %115 = arith.addf %113, %114 : vector<16x16xf32>
    %116 = arith.mulf %111, %115 : vector<16x16xf32>
    %117 = arith.addf %102, %103 : vector<16x16xf32>
    %cst_51 = arith.constant 9.99999974E-5 : f32
    %118 = vector.broadcast %cst_51 : f32 to vector<16x16xf32>
    %119 = arith.addf %117, %118 : vector<16x16xf32>
    %120 = arith.addf %105, %106 : vector<16x16xf32>
    %cst_52 = arith.constant 8.99999984E-4 : f32
    %121 = vector.broadcast %cst_52 : f32 to vector<16x16xf32>
    %122 = arith.addf %120, %121 : vector<16x16xf32>
    %123 = arith.mulf %119, %122 : vector<16x16xf32>
    %124 = arith.divf %116, %123 : vector<16x16xf32>
    %cst_53 = arith.constant dense<0.000000e+00> : vector<16xf32>
    %125 = vector.multi_reduction <add>, %124, %cst_53 [1] : vector<16x16xf32> to vector<16xf32>
    %126 = vector.shape_cast %125 : vector<16xf32> to vector<16x1xf32>
    %cst_54 = arith.constant dense<0.000000e+00> : vector<1xf32>
    %127 = vector.multi_reduction <add>, %126, %cst_54 [0] : vector<16x1xf32> to vector<1xf32>
    %128 = vector.shape_cast %127 : vector<1xf32> to vector<1x1xf32>
    %c2 = arith.constant 2 : index
    %c0_55 = arith.constant 0 : index
    %c0_56 = arith.constant 0 : index
    %129 = vector.load %arg5[%c2, %c0_55, %c0_56] : memref<4x1x1xf32, #tpu.memory_space<vmem>>, vector<1x1x1xf32>
    %130 = vector.shape_cast %129 : vector<1x1x1xf32> to vector<1x1xf32>
    %131 = vector.shape_cast %128 : vector<1x1xf32> to vector<1x1x1xf32>
    tpu.vector_store %arg5[%c2, %c0_55, %c0_56], %131 {strides = array<i32>} : memref<4x1x1xf32, #tpu.memory_space<vmem>>, vector<1x1x1xf32>,
    %132 = vector.extract_strided_slice %4 {offsets = [48, 0], sizes = [16, 16], strides = [1, 1]} : vector<64x16xf32> to vector<16x16xf32>
    %cst_57 = arith.constant dense<0.000000e+00> : vector<16x16xf32>
    %133 = tpu.matmul %2, %132, %cst_57 {dimension_numbers = #tpu.dot_dimension_numbers<[1], [0], [0], [1], [0, 0, 1, 1], [], []>} : vector<16x16xf32>, vector<16x16xf32>, vector<16x16xf32> -> vector<16x16xf32>
    %134 = vector.extract_strided_slice %5 {offsets = [48, 0], sizes = [16, 16], strides = [1, 1]} : vector<64x16xf32> to vector<16x16xf32>
    %cst_58 = arith.constant dense<0.000000e+00> : vector<16x16xf32>
    %135 = tpu.matmul %2, %134, %cst_58 {dimension_numbers = #tpu.dot_dimension_numbers<[1], [0], [0], [1], [0, 0, 1, 1], [], []>} : vector<16x16xf32>, vector<16x16xf32>, vector<16x16xf32> -> vector<16x16xf32>
    %136 = vector.extract_strided_slice %7 {offsets = [48, 0], sizes = [16, 16], strides = [1, 1]} : vector<64x16xf32> to vector<16x16xf32>
    %cst_59 = arith.constant dense<0.000000e+00> : vector<16x16xf32>
    %137 = tpu.matmul %2, %136, %cst_59 {dimension_numbers = #tpu.dot_dimension_numbers<[1], [0], [0], [1], [0, 0, 1, 1], [], []>} : vector<16x16xf32>, vector<16x16xf32>, vector<16x16xf32> -> vector<16x16xf32>
    %138 = vector.extract_strided_slice %9 {offsets = [48, 0], sizes = [16, 16], strides = [1, 1]} : vector<64x16xf32> to vector<16x16xf32>
    %cst_60 = arith.constant dense<0.000000e+00> : vector<16x16xf32>
    %139 = tpu.matmul %2, %138, %cst_60 {dimension_numbers = #tpu.dot_dimension_numbers<[1], [0], [0], [1], [0, 0, 1, 1], [], []>} : vector<16x16xf32>, vector<16x16xf32>, vector<16x16xf32> -> vector<16x16xf32>
    %140 = vector.extract_strided_slice %11 {offsets = [48, 0], sizes = [16, 16], strides = [1, 1]} : vector<64x16xf32> to vector<16x16xf32>
    %cst_61 = arith.constant dense<0.000000e+00> : vector<16x16xf32>
    %141 = tpu.matmul %2, %140, %cst_61 {dimension_numbers = #tpu.dot_dimension_numbers<[1], [0], [0], [1], [0, 0, 1, 1], [], []>} : vector<16x16xf32>, vector<16x16xf32>, vector<16x16xf32> -> vector<16x16xf32>
    %142 = arith.mulf %133, %133 : vector<16x16xf32>
    %143 = arith.mulf %135, %135 : vector<16x16xf32>
    %144 = arith.mulf %133, %135 : vector<16x16xf32>
    %145 = arith.subf %137, %142 : vector<16x16xf32>
    %146 = arith.subf %139, %143 : vector<16x16xf32>
    %147 = arith.subf %141, %144 : vector<16x16xf32>
    %cst_62 = arith.constant 2.000000e+00 : f32
    %148 = vector.broadcast %cst_62 : f32 to vector<16x16xf32>
    %149 = arith.mulf %148, %144 : vector<16x16xf32>
    %cst_63 = arith.constant 9.99999974E-5 : f32
    %150 = vector.broadcast %cst_63 : f32 to vector<16x16xf32>
    %151 = arith.addf %149, %150 : vector<16x16xf32>
    %cst_64 = arith.constant 2.000000e+00 : f32
    %152 = vector.broadcast %cst_64 : f32 to vector<16x16xf32>
    %153 = arith.mulf %152, %147 : vector<16x16xf32>
    %cst_65 = arith.constant 8.99999984E-4 : f32
    %154 = vector.broadcast %cst_65 : f32 to vector<16x16xf32>
    %155 = arith.addf %153, %154 : vector<16x16xf32>
    %156 = arith.mulf %151, %155 : vector<16x16xf32>
    %157 = arith.addf %142, %143 : vector<16x16xf32>
    %cst_66 = arith.constant 9.99999974E-5 : f32
    %158 = vector.broadcast %cst_66 : f32 to vector<16x16xf32>
    %159 = arith.addf %157, %158 : vector<16x16xf32>
    %160 = arith.addf %145, %146 : vector<16x16xf32>
    %cst_67 = arith.constant 8.99999984E-4 : f32
    %161 = vector.broadcast %cst_67 : f32 to vector<16x16xf32>
    %162 = arith.addf %160, %161 : vector<16x16xf32>
    %163 = arith.mulf %159, %162 : vector<16x16xf32>
    %164 = arith.divf %156, %163 : vector<16x16xf32>
    %cst_68 = arith.constant dense<0.000000e+00> : vector<16xf32>
    %165 = vector.multi_reduction <add>, %164, %cst_68 [1] : vector<16x16xf32> to vector<16xf32>
    %166 = vector.shape_cast %165 : vector<16xf32> to vector<16x1xf32>
    %cst_69 = arith.constant dense<0.000000e+00> : vector<1xf32>
    %167 = vector.multi_reduction <add>, %166, %cst_69 [0] : vector<16x1xf32> to vector<1xf32>
    %168 = vector.shape_cast %167 : vector<1xf32> to vector<1x1xf32>
    %c3 = arith.constant 3 : index
    %c0_70 = arith.constant 0 : index
    %c0_71 = arith.constant 0 : index
    %169 = vector.load %arg5[%c3, %c0_70, %c0_71] : memref<4x1x1xf32, #tpu.memory_space<vmem>>, vector<1x1x1xf32>
    %170 = vector.shape_cast %169 : vector<1x1x1xf32> to vector<1x1xf32>
    %171 = vector.shape_cast %168 : vector<1x1xf32> to vector<1x1x1xf32>
    tpu.vector_store %arg5[%c3, %c0_70, %c0_71], %171 {strides = array<i32>} : memref<4x1x1xf32, #tpu.memory_space<vmem>>, vector<1x1x1xf32>,
    return
  }
  func.func @transform_0(%arg0: i32) -> (i32, i32) {
    %c0_i32 = arith.constant 0 : i32
    %c0_i32_0 = arith.constant 0 : i32
    return %arg0, %c0_i32 : i32, i32
  }
  func.func @transform_1(%arg0: i32) -> (i32, i32) {
    %c0_i32 = arith.constant 0 : i32
    %c0_i32_0 = arith.constant 0 : i32
    return %arg0, %c0_i32 : i32, i32
  }
  func.func @transform_2(%arg0: i32) -> (i32, i32) {
    %c0_i32 = arith.constant 0 : i32
    %c0_i32_0 = arith.constant 0 : i32
    %c0_i32_1 = arith.constant 0 : i32
    return %c0_i32, %c0_i32_0 : i32, i32
  }
  func.func @transform_3(%arg0: i32) -> (i32, i32) {
    %c0_i32 = arith.constant 0 : i32
    %c0_i32_0 = arith.constant 0 : i32
    %c0_i32_1 = arith.constant 0 : i32
    return %c0_i32, %c0_i32_0 : i32, i32
  }
  func.func @transform_4(%arg0: i32) -> (i32, i32, i32) {
    %c0_i32 = arith.constant 0 : i32
    %c0_i32_0 = arith.constant 0 : i32
    %c0_i32_1 = arith.constant 0 : i32
    return %arg0, %c0_i32, %c0_i32_0 : i32, i32, i32
  }
}

</mosaic_0001>

<bundles_post_ra>
// kernel: tpu_custom_call.1
= control target key start
LH: loop header
LB: loop body
LE: loop exit
PB: predicated region body
PF: predicated region fallthrough
CT: control target
= control target key end

     0   :  { %s3285_s15 = smov 0   ;;  %s3534_s0 = inlined_call_operand.vmem [shape: f32[128,16], index: 0, kind: input, shape index: {}]   ;;  %s3535_s1 = inlined_call_operand.vmem [shape: f32[128,16], index: 1, kind: input, shape index: {}]   ;;  %s3536_s2 = inlined_call_operand.vmem [shape: f32[16,16], index: 2, kind: input, shape index: {}]   ;;  %s3537_s3 = inlined_call_operand.vmem [shape: f32[16,16], index: 3, kind: input, shape index: {}]   ;;  %s3538_s4 = inlined_call_operand.vmem [shape: f32[8,1,1], index: 4, kind: output, shape index: {}]  }
   0x1 LB: > { %s2683_s16 = sadd.s32 4294967295, %s3258_s15   ;;  %p2687_p0 = scmp.ge.s32.totalorder %s3258_s15, 1  ;;  %s3258_s15 = sphi %s3285_s15, %s14_s15  }
   0x2   : > { %p174_p1 = scmp.lt.s32.totalorder %s3258_s15, 3 }
   0x4   : > { %p175_p2 = pnand %p2687_p0, %p174_p1 }
   0x5   : > { %v239_v0 = vld [vmem:[%s3537_s3] sm:$0xff] (!%p175_p2)  ;;  %v240_v1 = vld [vmem:[%s3537_s3 + $0x8] sm:$0xff] (!%p175_p2)  ;;  %s2688_s21 = sshll.u32 (!%p175_p2), %s2683_s16, 3  ;;  %vm241_vm0 = vcmask (!%p175_p2), 130048   ;;  %s2692_s7 = sshll.u32 (!%p175_p2), %s2683_s16, 2  ;;  %vm1341_vm1 = vcmask (!%p175_p2), 0  }
   0x6   : > { %178 = sbr.rel (%p175_p2) target bundleno = 689 (0x2b1), region = 36  ;;  %v3301_v2 = vpack.c.bf16 (!%p175_p2), %v240_v1, %v239_v0  ;;  %p205_p3 = scmp.lt.s32.totalorder (!%p175_p2), %s2688_s21, 15  ;;  %v3394_v43 = vld [vmem:[%s3536_s2] sm:$0xff] (!%p175_p2)  ;;  %v3403_v53 = vld [vmem:[%s3536_s2 + $0x8] sm:$0xff] (!%p175_p2) }
   0x7   : > { %p217_p4 = scmp.lt.s32.totalorder (!%p175_p2), %s2692_s7, 7 }
   0x8   : > { %3129 = vmatprep.subr.bf16.mxu0 (!%p175_p2), %v3301_v2  ;;  %3133 = vmatprep.subr.bf16.mxu1 (!%p175_p2), %v3301_v2 }
   0x9   : > { %3131 = vmatpush3.bf16.msra.mxu0 (!%p175_p2), %v3301_v2  ;;  %3135 = vmatpush3.bf16.msra.mxu1 (!%p175_p2), %v3301_v2 }
   0xa   : > { %3137 = vmatprep.subr.bf16.mxu0 (!%p175_p2), %v3301_v2  ;;  %3141 = vmatprep.subr.bf16.mxu1 (!%p175_p2), %v3301_v2 }
   0xd   : > { %s3540_s21 = smov (!%p205_p3, %s2688_s21), 15  ;;  %s3542_s7 = smov (!%p217_p4, %s2692_s7), 7 }
   0xe   : > { %s2689_s22 = sshll.u32 %s3540_s21, 3  ;;  %s3521_s10 = scalar_lea.vmem %s3538_s4, %s3542_s7 }
   0xf   : > { %s3312_s25 = scalar_lea.vmem %s3534_s0, %s2689_s22  ;;  %s3317_s28 = scalar_lea.vmem %s3535_s1, %s2689_s22 }
  0x10   : > { %v221_v3 = vld [vmem:[%s3312_s25] sm:$0xff]  ;;  %v3321_v4 = vld [vmem:[%s3312_s25 + $0x8] sm:$0xff]  ;;  %v3324_v5 = vld [vmem:[%s3312_s25 + $0x10] sm:$0xff] }
  0x11   : > { %2912 = vmatprep.mubr.msk.f32.mxu0 %vm241_vm0, %v221_v3  ;;  %v229_v6 = vld [vmem:[%s3317_s28] sm:$0xff]  ;;  %v230_v7 = vld [vmem:[%s3317_s28 + $0x8] sm:$0xff]  ;;  %v231_v8 = vld [vmem:[%s3317_s28 + $0x10] sm:$0xff]  ;;  %v500_v17 = vmul.f32 %v221_v3, %v221_v3  ;;  %v501_v21 = vmul.f32 %v3321_v4, %v3321_v4  ;;  %v502_v22 = vmul.f32 %v3324_v5, %v3324_v5 }
  0x12   : > { %2913 = vmatmul.mubr.msk.f32.vlgmr.msra.gmra.mrb[0].mxu0 %vm241_vm0, %v3321_v4  ;;  %2928 = vmatprep.mubr.msk.f32.mxu1 %vm241_vm0, %v229_v6  ;;  %v224_v9 = vld [vmem:[%s3312_s25 + $0x18] sm:$0xff]  ;;  %v225_v10 = vld [vmem:[%s3312_s25 + $0x20] sm:$0xff]  ;;  %v226_v13 = vld [vmem:[%s3312_s25 + $0x28] sm:$0xff]  ;;  %v637_v19 = vmul.f32 %v229_v6, %v229_v6  ;;  %v638_v23 = vmul.f32 %v230_v7, %v230_v7  ;;  %v639_v24 = vmul.f32 %v231_v8, %v231_v8 }
  0x13   : > { %2915 = vmatprep.mubr.msk.f32.mxu0 %vm241_vm0, %v3324_v5  ;;  %2929 = vmatmul.mubr.msk.f32.vlgmr.msra.gmra.mrb[0].mxu1 %vm241_vm0, %v230_v7  ;;  %v232_v11 = vld [vmem:[%s3317_s28 + $0x18] sm:$0xff]  ;;  %v233_v12 = vld [vmem:[%s3317_s28 + $0x20] sm:$0xff]  ;;  %v227_v14 = vld [vmem:[%s3312_s25 + $0x30] sm:$0xff]  ;;  %v503_v25 = vmul.f32 %v224_v9, %v224_v9  ;;  %v504_v26 = vmul.f32 %v225_v10, %v225_v10  ;;  %v505_v29 = vmul.f32 %v226_v13, %v226_v13 }
  0x14   : > { %2931 = vmatprep.mubr.msk.f32.mxu1 %vm241_vm0, %v231_v8  ;;  %3139 = vmatpush3.bf16.msra.mxu0 %v3301_v2  ;;  %v234_v15 = vld [vmem:[%s3317_s28 + $0x28] sm:$0xff]  ;;  %v235_v16 = vld [vmem:[%s3317_s28 + $0x30] sm:$0xff]  ;;  %v228_v18 = vld [vmem:[%s3312_s25 + $0x38] sm:$0xff]  ;;  %v640_v27 = vmul.f32 %v232_v11, %v232_v11  ;;  %v641_v28 = vmul.f32 %v233_v12, %v233_v12  ;;  %v506_v30 = vmul.f32 %v227_v14, %v227_v14 }
  0x15   : > { %3143 = vmatpush3.bf16.msra.mxu1 %v3301_v2  ;;  %3145 = vmatprep.subr.bf16.mxu0 %v3301_v2  ;;  %v236_v20 = vld [vmem:[%s3317_s28 + $0x38] sm:$0xff]  ;;  %v642_v31 = vmul.f32 %v234_v15, %v234_v15  ;;  %v643_v32 = vmul.f32 %v235_v16, %v235_v16  ;;  %v507_v33 = vmul.f32 %v228_v18, %v228_v18 }
  0x16   : > { %2916 = vmatmul.mubr.msk.f32.gmra.mrb[2].mxu0 %vm241_vm0, %v224_v9  ;;  %v774_v34 = vmul.f32 %v229_v6, %v221_v3  ;;  %v644_v35 = vmul.f32 %v236_v20, %v236_v20  ;;  %v775_v36 = vmul.f32 %v230_v7, %v3321_v4  ;;  %v776_v37 = vmul.f32 %v231_v8, %v3324_v5 }
  0x17   : > { %2918 = vmatprep.mubr.msk.f32.mxu0 %vm241_vm0, %v225_v10  ;;  %2932 = vmatmul.mubr.msk.f32.gmra.mrb[2].mxu1 %vm241_vm0, %v232_v11  ;;  %v777_v38 = vmul.f32 %v232_v11, %v224_v9  ;;  %v778_v39 = vmul.f32 %v233_v12, %v225_v10  ;;  %v779_v40 = vmul.f32 %v234_v15, %v226_v13 }
  0x18   : > { %2934 = vmatprep.mubr.msk.f32.mxu1 %vm241_vm0, %v233_v12  ;;  %v780_v41 = vmul.f32 %v235_v16, %v227_v14  ;;  %v781_v42 = vmul.f32 %v236_v20, %v228_v18 }
  0x1a   : > { %2919 = vmatmul.mubr.msk.f32.gmra.mrb[4].mxu0 %vm241_vm0, %v226_v13 }
  0x1b   : > { %2921 = vmatprep.mubr.msk.f32.mxu0 %vm241_vm0, %v227_v14  ;;  %2935 = vmatmul.mubr.msk.f32.gmra.mrb[4].mxu1 %vm241_vm0, %v234_v15 }
  0x1c   : > { %2937 = vmatprep.mubr.msk.f32.mxu1 %vm241_vm0, %v235_v16 }
  0x1e   : > { %2922 = vmatmul.mubr.msk.f32.gmra.mrb[6].mxu0 %vm241_vm0, %v228_v18 }
  0x1f   : > { %2944 = vmatprep.mubr.msk.f32.mxu0 %vm241_vm0, %v500_v17  ;;  %2938 = vmatmul.mubr.msk.f32.gmra.mrb[6].mxu1 %vm241_vm0, %v236_v20 }
  0x20   : > { %2960 = vmatprep.mubr.msk.f32.mxu1 %vm241_vm0, %v637_v19 }
  0x22   : > { %2945 = vmatmul.mubr.msk.f32.vlgmr.msra.gmra.mrb[8].mxu0 %vm241_vm0, %v501_v21 }
  0x23   : > { %2947 = vmatprep.mubr.msk.f32.mxu0 %vm241_vm0, %v502_v22  ;;  %2961 = vmatmul.mubr.msk.f32.vlgmr.msra.gmra.mrb[8].mxu1 %vm241_vm0, %v638_v23 }
  0x24   : > { %3147 = vmatpush3.bf16.msra.mxu0 %v3301_v2  ;;  %2963 = vmatprep.mubr.msk.f32.mxu1 %vm241_vm0, %v639_v24 }
  0x26   : > { %2948 = vmatmul.mubr.msk.f32.gmra.mrb[10].mxu0 %vm241_vm0, %v503_v25 }
  0x27   : > { %2950 = vmatprep.mubr.msk.f32.mxu0 %vm241_vm0, %v504_v26  ;;  %2964 = vmatmul.mubr.msk.f32.gmra.mrb[10].mxu1 %vm241_vm0, %v640_v27 }
  0x28   : > { %2966 = vmatprep.mubr.msk.f32.mxu1 %vm241_vm0, %v641_v28 }
  0x2a   : > { %2951 = vmatmul.mubr.msk.f32.gmra.mrb[12].mxu0 %vm241_vm0, %v505_v29 }
  0x2b   : > { %2953 = vmatprep.mubr.msk.f32.mxu0 %vm241_vm0, %v506_v30  ;;  %2967 = vmatmul.mubr.msk.f32.gmra.mrb[12].mxu1 %vm241_vm0, %v642_v31 }
  0x2c   : > { %2969 = vmatprep.mubr.msk.f32.mxu1 %vm241_vm0, %v643_v32 }
  0x2e   : > { %2954 = vmatmul.mubr.msk.f32.gmra.mrb[14].mxu0 %vm241_vm0, %v507_v33 }
  0x2f   : > { %2976 = vmatprep.mubr.msk.f32.mxu0 %vm241_vm0, %v774_v34  ;;  %2970 = vmatmul.mubr.msk.f32.gmra.mrb[14].mxu1 %vm241_vm0, %v644_v35 }
  0x30   : > { %2992 = vmatprep.mubr.msk.f32.mxu1 %vm241_vm0, %v3394_v43 }
  0x32   : > { %2977 = vmatmul.mubr.msk.f32.vlgmr.msra.gmra.mrb[16].mxu0 %vm241_vm0, %v775_v36 }
  0x33   : > { %2979 = vmatprep.mubr.msk.f32.mxu0 %vm241_vm0, %v776_v37 }
  0x36   : > { %2980 = vmatmul.mubr.msk.f32.gmra.mrb[18].mxu0 %vm241_vm0, %v777_v38 }
  0x37   : > { %2982 = vmatprep.mubr.msk.f32.mxu0 %vm241_vm0, %v778_v39 }
  0x3a   : > { %2983 = vmatmul.mubr.msk.f32.gmra.mrb[20].mxu0 %vm241_vm0, %v779_v40 }
  0x3b   : > { %2985 = vmatprep.mubr.msk.f32.mxu0 %vm241_vm0, %v780_v41 }
  0x3e   : > { %2986 = vmatmul.mubr.msk.f32.gmra.mrb[22].mxu0 %vm241_vm0, %v781_v42 }
  0x3f   : > { %3020 = vmatprep.mubr.msk.f32.mxu0 %vm241_vm0, %v3394_v43 }
  0xe5   : > { %v2914_v44 = vpop.f32.mrb[0].mxu0 }
  0xe6   : > { %v332_v45 = vpop.f32.mrb[1].mxu0  ;;  %v2930_v46 = vpop.f32.mrb[0].mxu1 }
  0xe7   : > { %v3148_v47 = vpack.c.bf16 %v2914_v44, %v332_v45  ;;  %v461_v48 = vpop.f32.mrb[1].mxu1 }
  0xe8   : > { %v3152_v49 = vpack.c.bf16 %v2930_v46, %v461_v48 }
  0xe9   : > { %v2917_v50 = vpop.f32.mrb[2].mxu0  ;;  %3149 = vmatprep.subr.bf16.mxu1 %v3148_v47 }
  0xea   : > { %v342_v51 = vpop.f32.mrb[3].mxu0  ;;  %3151 = vmatpush3.bf16.msra.mxu1 %v3148_v47  ;;  %v2933_v52 = vpop.f32.mrb[2].mxu1 }
  0xeb   : > { %v3168_v54 = vpack.c.bf16 %v2917_v50, %v342_v51  ;;  %v471_v55 = vpop.f32.mrb[3].mxu1  ;;  %3153 = vmatprep.subr.bf16.mxu1 %v3152_v49 }
  0xec   : > { %v3405_v56 = vpack.c.bf16 %v2933_v52, %v471_v55 }
  0xed   : > { %v2920_v57 = vpop.f32.mrb[4].mxu0  ;;  %2993 = vmatmul.mubr.msk.f32.vlgmr.msra.gmra.mrb[16].mxu1 %vm241_vm0, %v3403_v53 }
  0xee   : > { %v352_v58 = vpop.f32.mrb[5].mxu0  ;;  %v2936_v59 = vpop.f32.mrb[4].mxu1  ;;  %3155 = vmatpush3.bf16.msra.mxu1 %v3152_v49  ;;  %2999 = vmatprep.mubr.msk.f32.mxu1 %vm241_vm0, %v3394_v43 }
  0xef   : > { %v3411_v60 = vpack.c.bf16 %v2920_v57, %v352_v58  ;;  %v481_v61 = vpop.f32.mrb[5].mxu1 }
  0xf0   : > { %v3413_v62 = vpack.c.bf16 %v2936_v59, %v481_v61 }
  0xf1   : > { %v2923_v63 = vpop.f32.mrb[6].mxu0  ;;  %3000 = vmatmul.mubr.msk.f32.vlgmr.msra.gmra.mrb[18].mxu1 %vm241_vm0, %v3403_v53 }
  0xf2   : > { %v362_v0 = vpop.f32.mrb[7].mxu0  ;;  %v2939_v1 = vpop.f32.mrb[6].mxu1  ;;  %3006 = vmatprep.mubr.msk.f32.mxu1 %vm241_vm0, %v3394_v43 }
  0xf3   : > { %v3419_v2 = vpack.c.bf16 %v2923_v63, %v362_v0  ;;  %v491_v3 = vpop.f32.mrb[7].mxu1 }
  0xf4   : > { %v3421_v4 = vpack.c.bf16 %v2939_v1, %v491_v3 }
  0xf5   : > { %v2946_v5 = vpop.f32.mrb[8].mxu0 }
  0xf6   : > { %v598_v6 = vpop.f32.mrb[9].mxu0  ;;  %v2962_v7 = vpop.f32.mrb[8].mxu1 }
  0xf7   : > { %v3156_v8 = vpack.c.bf16 %v2946_v5, %v598_v6  ;;  %v735_v9 = vpop.f32.mrb[9].mxu1 }
  0xf8   : > { %v3160_v10 = vpack.c.bf16 %v2962_v7, %v735_v9 }
  0xf9   : > { %v2949_v11 = vpop.f32.mrb[10].mxu0  ;;  %3157 = vmatprep.subr.bf16.mxu1 %v3156_v8 }
  0xfa   : > { %v608_v12 = vpop.f32.mrb[11].mxu0  ;;  %3159 = vmatpush3.bf16.msra.mxu1 %v3156_v8  ;;  %v2965_v13 = vpop.f32.mrb[10].mxu1 }
  0xfb   : > { %v3176_v14 = vpack.c.bf16 %v2949_v11, %v608_v12  ;;  %3161 = vmatprep.subr.bf16.mxu1 %v3160_v10  ;;  %v745_v15 = vpop.f32.mrb[11].mxu1 }
  0xfc   : > { %v3180_v16 = vpack.c.bf16 %v2965_v13, %v745_v15 }
  0xfd   : > { %v2952_v17 = vpop.f32.mrb[12].mxu0  ;;  %3007 = vmatmul.mubr.msk.f32.vlgmr.msra.gmra.mrb[20].mxu1 %vm241_vm0, %v3403_v53 }
  0xfe   : > { %v618_v18 = vpop.f32.mrb[13].mxu0  ;;  %3163 = vmatpush3.bf16.msra.mxu1 %v3160_v10  ;;  %3013 = vmatprep.mubr.msk.f32.mxu1 %vm241_vm0, %v3394_v43  ;;  %v2968_v19 = vpop.f32.mrb[12].mxu1 }
  0xff   : > { %v3196_v20 = vpack.c.bf16 %v2952_v17, %v618_v18  ;;  %3169 = vmatprep.subr.bf16.mxu1 %v3168_v54  ;;  %v755_v21 = vpop.f32.mrb[13].mxu1 }
 0x100   : > { %v3200_v22 = vpack.c.bf16 %v2968_v19, %v755_v21 }
 0x101   : > { %v2955_v23 = vpop.f32.mrb[14].mxu0  ;;  %3014 = vmatmul.mubr.msk.f32.vlgmr.msra.gmra.mrb[22].mxu1 %vm241_vm0, %v3403_v53 }
 0x102   : > { %v628_v24 = vpop.f32.mrb[15].mxu0  ;;  %3171 = vmatpush3.bf16.msra.mxu1 %v3168_v54  ;;  %3027 = vmatprep.mubr.msk.f32.mxu1 %vm241_vm0, %v3394_v43  ;;  %v2971_v25 = vpop.f32.mrb[14].mxu1 }
 0x103   : > { %v3216_v26 = vpack.c.bf16 %v2955_v23, %v628_v24  ;;  %3177 = vmatprep.subr.bf16.mxu1 %v3176_v14  ;;  %v765_v27 = vpop.f32.mrb[15].mxu1 }
 0x104   : > { %v3431_v28 = vpack.c.bf16 %v2971_v25, %v765_v27 }
 0x105   : > { %v2978_v29 = vpop.f32.mrb[16].mxu0  ;;  %3028 = vmatmul.mubr.msk.f32.vlgmr.msra.gmra.mrb[24].mxu1 %vm241_vm0, %v3403_v53 }
 0x106   : > { %v872_v30 = vpop.f32.mrb[17].mxu0  ;;  %3179 = vmatpush3.bf16.msra.mxu1 %v3176_v14  ;;  %3041 = vmatprep.mubr.msk.f32.mxu1 %vm241_vm0, %v3394_v43 }
 0x107   : > { %v3164_v31 = vpack.c.bf16 %v2978_v29, %v872_v30 }
 0x109   : > { %v2981_v32 = vpop.f32.mrb[18].mxu0  ;;  %3165 = vmatprep.subr.bf16.mxu0 %v3164_v31  ;;  %3042 = vmatmul.mubr.msk.f32.vlgmr.msra.gmra.mrb[26].mxu1 %vm241_vm0, %v3403_v53 }
 0x10a   : > { %v882_v33 = vpop.f32.mrb[19].mxu0  ;;  %3167 = vmatpush3.bf16.msra.mxu0 %v3164_v31  ;;  %3055 = vmatprep.mubr.msk.f32.mxu1 %vm241_vm0, %v3394_v43 }
 0x10b   : > { %v3184_v34 = vpack.c.bf16 %v2981_v32, %v882_v33  ;;  %3173 = vmatprep.subr.bf16.mxu0 %v3405_v56 }
 0x10d   : > { %3021 = vmatmul.mubr.msk.f32.vlgmr.msra.gmra.mrb[24].mxu0 %vm241_vm0, %v3403_v53  ;;  %3185 = vmatprep.subr.bf16.mxu1 %v3184_v34  ;;  %v2984_v35 = vpop.f32.mrb[20].mxu0 }
 0x10e   : > { %3175 = vmatpush3.bf16.msra.mxu0 %v3405_v56  ;;  %3187 = vmatpush3.bf16.msra.mxu1 %v3184_v34  ;;  %v892_v36 = vpop.f32.mrb[21].mxu0 }
 0x10f   : > { %3193 = vmatprep.subr.bf16.mxu1 %v3413_v62  ;;  %3034 = vmatprep.mubr.msk.f32.mxu0 %vm241_vm0, %v3394_v43  ;;  %v3204_v37 = vpack.c.bf16 %v2984_v35, %v892_v36 }
 0x110   : > { %3181 = vmatprep.subr.bf16.mxu0 %v3180_v16 }
 0x111   : > { %3035 = vmatmul.mubr.msk.f32.vlgmr.msra.gmra.mrb[26].mxu0 %vm241_vm0, %v3403_v53  ;;  %3056 = vmatmul.mubr.msk.f32.vlgmr.msra.gmra.mrb[28].mxu1 %vm241_vm0, %v3403_v53  ;;  %v2987_v38 = vpop.f32.mrb[22].mxu0 }
 0x112   : > { %3183 = vmatpush3.bf16.msra.mxu0 %v3180_v16  ;;  %3195 = vmatpush3.bf16.msra.mxu1 %v3413_v62  ;;  %v902_v39 = vpop.f32.mrb[23].mxu0 }
 0x113   : > { %3189 = vmatprep.subr.bf16.mxu0 %v3411_v60  ;;  %3048 = vmatprep.mubr.msk.f32.mxu0 %vm241_vm0, %v3394_v43  ;;  %v3224_v40 = vpack.c.bf16 %v2987_v38, %v902_v39 }
 0x114   : > { %3069 = vmatprep.mubr.msk.f32.mxu1 %vm241_vm0, %v3394_v43  ;;  %3201 = vmatprep.subr.bf16.mxu1 %v3200_v22 }
 0x115   : > { %3049 = vmatmul.mubr.msk.f32.vlgmr.msra.gmra.mrb[28].mxu0 %vm241_vm0, %v3403_v53  ;;  %3070 = vmatmul.mubr.msk.f32.vlgmr.msra.gmra.mrb[30].mxu1 %vm241_vm0, %v3403_v53 }
 0x116   : > { %3191 = vmatpush3.bf16.msra.mxu0 %v3411_v60  ;;  %3203 = vmatpush3.bf16.msra.mxu1 %v3200_v22 }
 0x117   : > { %3197 = vmatprep.subr.bf16.mxu0 %v3196_v20  ;;  %3209 = vmatprep.subr.bf16.mxu1 %v3419_v2 }
 0x118   : > { %3062 = vmatprep.mubr.msk.f32.mxu0 %vm241_vm0, %v3394_v43  ;;  %3083 = vmatprep.mubr.msk.f32.mxu1 %vm241_vm0, %v3394_v43 }
 0x119   : > { %3063 = vmatmul.mubr.msk.f32.vlgmr.msra.gmra.mrb[30].mxu0 %vm241_vm0, %v3403_v53  ;;  %3084 = vmatmul.mubr.msk.f32.vlgmr.msra.gmra.mrb[32].mxu1 %vm241_vm0, %v3403_v53 }
 0x11a   : > { %3199 = vmatpush3.bf16.msra.mxu0 %v3196_v20  ;;  %3211 = vmatpush3.bf16.msra.mxu1 %v3419_v2 }
 0x11b   : > { %3217 = vmatprep.subr.bf16.mxu1 %v3216_v26  ;;  %3076 = vmatprep.mubr.msk.f32.mxu0 %vm241_vm0, %v3394_v43 }
 0x11c   : > { %3205 = vmatprep.subr.bf16.mxu0 %v3204_v37  ;;  %3097 = vmatprep.mubr.msk.f32.mxu1 %vm241_vm0, %v3394_v43 }
 0x11d   : > { %3077 = vmatmul.mubr.msk.f32.vlgmr.msra.gmra.mrb[32].mxu0 %vm241_vm0, %v3403_v53  ;;  %3098 = vmatmul.mubr.msk.f32.vlgmr.msra.gmra.mrb[34].mxu1 %vm241_vm0, %v3403_v53 }
 0x11e   : > { %3207 = vmatpush3.bf16.msra.mxu0 %v3204_v37  ;;  %3219 = vmatpush3.bf16.msra.mxu1 %v3216_v26 }
 0x11f   : > { %3213 = vmatprep.subr.bf16.mxu0 %v3421_v4  ;;  %3090 = vmatprep.mubr.msk.f32.mxu0 %vm241_vm0, %v3394_v43 }
 0x120   : > { %3111 = vmatprep.mubr.msk.f32.mxu1 %vm241_vm0, %v3394_v43  ;;  %3225 = vmatprep.subr.bf16.mxu1 %v3224_v40 }
 0x121   : > { %3091 = vmatmul.mubr.msk.f32.vlgmr.msra.gmra.mrb[34].mxu0 %vm241_vm0, %v3403_v53  ;;  %3112 = vmatmul.mubr.msk.f32.vlgmr.msra.gmra.mrb[36].mxu1 %vm241_vm0, %v3403_v53 }
 0x122   : > { %3215 = vmatpush3.bf16.msra.mxu0 %v3421_v4  ;;  %3104 = vmatprep.mubr.msk.f32.mxu0 %vm241_vm0, %v3394_v43 }
 0x123   : > { %3221 = vmatprep.subr.bf16.mxu0 %v3431_v28  ;;  %3227 = vmatpush3.bf16.msra.mxu1 %v3224_v40 }
 0x124   : > { %3125 = vmatprep.mubr.msk.f32.mxu1 %vm241_vm0, %v3394_v43 }
 0x125   : > { %3105 = vmatmul.mubr.msk.f32.vlgmr.msra.gmra.mrb[36].mxu0 %vm241_vm0, %v3403_v53 }
 0x126   : > { %3223 = vmatpush3.bf16.msra.mxu0 %v3431_v28  ;;  %3118 = vmatprep.mubr.msk.f32.mxu0 %vm241_vm0, %v3394_v43 }
 0x127   : > { %3126 = vmatmul.mubr.msk.f32.vlgmr.msra.gmra.mrb[38].mxu1 %vm241_vm0, %v3403_v53 }
 0x129   : > { %3119 = vmatmul.mubr.msk.f32.vlgmr.msra.gmra.mrb[38].mxu0 %vm241_vm0, %v3403_v53 }
 0x1c0   : > { %v2994_v41 = vpop.f32.mrb[16].mxu1 }
 0x1c1   : > { %v983_v42 = vpop.f32.mrb[17].mxu1  ;;  %v1293_v46 = vmul.f32 %v2994_v41, %v2994_v41 }
 0x1c2   : > { %v1292_v44 = vmul.f32 %v983_v42, %v983_v42 }
 0x1c4   : > { %v3001_v45 = vpop.f32.mrb[18].mxu1 }
 0x1c5   : > { %v1295_v47 = vmul.f32 %v3001_v45, %v3001_v45  ;;  %v1297_v48 = vmul.f32 %v3001_v45, %v2994_v41  ;;  %v1058_v49 = vpop.f32.mrb[19].mxu1 }
 0x1c6   : > { %v1294_v50 = vmul.f32 %v1058_v49, %v1058_v49  ;;  %v1296_v51 = vmul.f32 %v1058_v49, %v983_v42 }
 0x1c7   : > { %v1315_v52 = vadd.f32 %v1295_v47, %v1293_v46  ;;  %v1305_v14 = vmul.f32 2.0, %v1297_v48 }
 0x1c8   : > { %v1314_v54 = vadd.f32 %v1294_v50, %v1292_v44  ;;  %v1304_v17 = vmul.f32 2.0, %v1296_v51 }
 0x1c9   : > { %v1317_v61 = vadd.f32 0.0001, %v1315_v52  ;;  %v1307_v23 = vadd.f32 0.0001, %v1305_v14 }
 0x1ca   : > { %v1316_v63 = vadd.f32 0.0001, %v1314_v54  ;;  %v1306_v29 = vadd.f32 0.0001, %v1304_v17 }
 0x1d0   : > { %v3008_v55 = vpop.f32.mrb[20].mxu1 }
 0x1d1   : > { %v1299_v43 = vsub.f32 %v3008_v55, %v1293_v46  ;;  %v1133_v56 = vpop.f32.mrb[21].mxu1 }
 0x1d2   : > { %v1298_v57 = vsub.f32 %v1133_v56, %v1292_v44 }
 0x1d4   : > { %v3015_v58 = vpop.f32.mrb[22].mxu1 }
 0x1d5   : > { %v1301_v59 = vsub.f32 %v3015_v58, %v1295_v47  ;;  %v1208_v60 = vpop.f32.mrb[23].mxu1 }
 0x1d6   : > { %v1300_v53 = vsub.f32 %v1208_v60, %v1294_v50 }
 0x1d7   : > { %v1319_v62 = vadd.f32 %v1301_v59, %v1299_v43 }
 0x1d8   : > { %v1318_v0 = vadd.f32 %v1300_v53, %v1298_v57  ;;  %v3029_v1 = vpop.f32.mrb[24].mxu1 }
 0x1d9   : > { %v1321_v2 = vadd.f32 0.0009, %v1319_v62  ;;  %v1719_v3 = vmul.f32 %v3029_v1, %v3029_v1  ;;  %v1409_v4 = vpop.f32.mrb[25].mxu1 }
 0x1da   : > { %v1320_v5 = vadd.f32 0.0009, %v1318_v0  ;;  %v1718_v6 = vmul.f32 %v1409_v4, %v1409_v4 }
 0x1db   : > { %v1323_v7 = vmul.f32 %v1321_v2, %v1317_v61 }
 0x1dc   : > { %v1322_v8 = vmul.f32 %v1320_v5, %v1316_v63  ;;  %v3043_v9 = vpop.f32.mrb[26].mxu1 }
 0x1dd   : > { %3236 = vrcp.f32 %v1323_v7  ;;  %v1725_v10 = vsub.f32 %v3043_v9, %v1719_v3  ;;  %v1559_v11 = vpop.f32.mrb[27].mxu1 }
 0x1de   : > { %v1724_v12 = vsub.f32 %v1559_v11, %v1718_v6  ;;  %3238 = vrcp.f32 %v1322_v8 }
 0x1e0   : > { %v3022_v13 = vpop.f32.mrb[24].mxu0 }
 0x1e1   : > { %v1303_v15 = vsub.f32 %v3022_v13, %v1297_v48  ;;  %v1283_v16 = vpop.f32.mrb[25].mxu0 }
 0x1e2   : > { %v1302_v18 = vsub.f32 %v1283_v16, %v1296_v51 }
 0x1e3   : > { %v1309_v19 = vmul.f32 2.0, %v1303_v15 }
 0x1e4   : > { %v1308_v20 = vmul.f32 2.0, %v1302_v18  ;;  %v3036_v21 = vpop.f32.mrb[26].mxu0  ;;  %v3057_v22 = vpop.f32.mrb[28].mxu1 }
 0x1e5   : > { %v1311_v24 = vadd.f32 0.0009, %v1309_v19  ;;  %v1721_v25 = vmul.f32 %v3036_v21, %v3036_v21  ;;  %v1723_v26 = vmul.f32 %v3036_v21, %v3029_v1  ;;  %v1484_v27 = vpop.f32.mrb[27].mxu0  ;;  %v1709_v28 = vpop.f32.mrb[29].mxu1 }
 0x1e6   : > { %v1310_v30 = vadd.f32 0.0009, %v1308_v20  ;;  %v1720_v31 = vmul.f32 %v1484_v27, %v1484_v27  ;;  %v1722_v32 = vmul.f32 %v1484_v27, %v1409_v4 }
 0x1e7   : > { %v3237_v33 = vpop.eup %3236  ;;  %v1313_v34 = vmul.f32 %v1311_v24, %v1307_v23  ;;  %v1731_v35 = vmul.f32 2.0, %v1723_v26  ;;  %v1741_v36 = vadd.f32 %v1721_v25, %v1719_v3  ;;  %v1729_v37 = vsub.f32 %v3057_v22, %v1723_v26 }
 0x1e8   : > { %v1312_v38 = vmul.f32 %v1310_v30, %v1306_v29  ;;  %v1730_v39 = vmul.f32 2.0, %v1722_v32  ;;  %v1740_v40 = vadd.f32 %v1720_v31, %v1718_v6  ;;  %v3050_v41 = vpop.f32.mrb[28].mxu0  ;;  %v1728_v42 = vsub.f32 %v1709_v28, %v1722_v32  ;;  %v3071_v44 = vpop.f32.mrb[30].mxu1 }
 0x1e9   : > { %v3239_v45 = vpop.eup %3238  ;;  %v1733_v46 = vadd.f32 0.0001, %v1731_v35  ;;  %v1743_v47 = vadd.f32 0.0001, %v1741_v36  ;;  %v1727_v48 = vsub.f32 %v3050_v41, %v1721_v25  ;;  %v1634_v49 = vpop.f32.mrb[29].mxu0  ;;  %v1735_v50 = vmul.f32 2.0, %v1729_v37 }
 0x1ea   : > { %v1732_v51 = vadd.f32 0.0001, %v1730_v39  ;;  %v1742_v52 = vadd.f32 0.0001, %v1740_v40  ;;  %v1726_v54 = vsub.f32 %v1634_v49, %v1720_v31  ;;  %v1327_v55 = vmul.f32 %v3237_v33, %v1313_v34  ;;  %v1910_v43 = vpop.f32.mrb[31].mxu1 }
 0x1eb   : > { %v1745_v56 = vadd.f32 %v1727_v48, %v1725_v10  ;;  %v1737_v57 = vadd.f32 0.0009, %v1735_v50  ;;  %v1734_v58 = vmul.f32 2.0, %v1728_v42  ;;  %v2147_v59 = vmul.f32 %v3071_v44, %v3071_v44 }
 0x1ec   : > { %v1744_v60 = vadd.f32 %v1726_v54, %v1724_v12  ;;  %v1331_v53 = vsel %vm241_vm0, %v1327_v55, 0.0  ;;  %v3064_v61 = vpop.f32.mrb[30].mxu0  ;;  %v2146_v62 = vmul.f32 %v1910_v43, %v1910_v43  ;;  %v3085_v63 = vpop.f32.mrb[32].mxu1  ;;  %v1325_v0 = vmul.f32 %v3239_v45, %v1312_v38 }
 0x1ed   : > { %v1747_v1 = vadd.f32 0.0009, %v1745_v56  ;;  %v3506_v2 = vmul.f32 %v1737_v57, %v1733_v46  ;;  %1332 = vadd.xlane.f32.xlu0 %v1331_v53  ;;  %v1736_v3 = vadd.f32 0.0009, %v1734_v58  ;;  %v2145_v4 = vmul.f32 %v3064_v61, %v3064_v61  ;;  %v1835_v5 = vpop.f32.mrb[31].mxu0  ;;  %v2060_v6 = vpop.f32.mrb[33].mxu1 }
 0x1ee   : > { %v1746_v7 = vadd.f32 0.0009, %v1744_v60  ;;  %v2149_v8 = vmul.f32 %v3071_v44, %v3064_v61  ;;  %v2144_v9 = vmul.f32 %v1835_v5, %v1835_v5  ;;  %v2148_v10 = vmul.f32 %v1910_v43, %v1835_v5 }
 0x1ef   : > { %v1749_v11 = vmul.f32 %v1747_v1, %v1743_v47  ;;  %v1738_v12 = vmul.f32 %v1736_v3, %v1732_v51  ;;  %v2167_v13 = vadd.f32 %v2147_v59, %v2145_v4  ;;  %v2153_v14 = vsub.f32 %v3085_v63, %v2147_v59 }
 0x1f0   : > { %v1748_v15 = vmul.f32 %v1746_v7, %v1742_v52  ;;  %v2166_v16 = vadd.f32 %v2146_v62, %v2144_v9  ;;  %v3078_v17 = vpop.f32.mrb[32].mxu0  ;;  %v3099_v18 = vpop.f32.mrb[34].mxu1  ;;  %v1328_v20 = vsel %vm241_vm0, %v1325_v0, 0.0  ;;  %v2152_v25 = vsub.f32 %v2060_v6, %v2146_v62 }
 0x1f1   : > { %3240 = vrcp.f32 %v1749_v11  ;;  %v2151_v19 = vsub.f32 %v3078_v17, %v2145_v4  ;;  %v1985_v21 = vpop.f32.mrb[33].mxu0  ;;  %v2261_v22 = vpop.f32.mrb[35].mxu1  ;;  %1329 = vadd.xlane.f32.xlu0 %v1328_v20  ;;  %v2571_v26 = vmul.f32 %v3099_v18, %v3099_v18  ;;  %v2157_v27 = vmul.f32 2.0, %v2149_v8 }
 0x1f2   : > { %3242 = vrcp.f32 %v1748_v15  ;;  %v2150_v24 = vsub.f32 %v1985_v21, %v2144_v9  ;;  %v2169_v28 = vadd.f32 0.0001, %v2167_v13  ;;  %v2156_v29 = vmul.f32 2.0, %v2148_v10 }
 0x1f3   : > { %v2171_v23 = vadd.f32 %v2153_v14, %v2151_v19  ;;  %v2570_v31 = vmul.f32 %v2261_v22, %v2261_v22  ;;  %v2168_v41 = vadd.f32 0.0001, %v2166_v16  ;;  %v2159_v46 = vadd.f32 0.0001, %v2157_v27 }
 0x1f4   : > { %v3092_v30 = vpop.f32.mrb[34].mxu0  ;;  %v3113_v32 = vpop.f32.mrb[36].mxu1  ;;  %v2170_v34 = vadd.f32 %v2152_v25, %v2150_v24  ;;  %v2158_v47 = vadd.f32 0.0001, %v2156_v29 }
 0x1f5   : > { %v2173_v33 = vadd.f32 0.0009, %v2171_v23  ;;  %v2155_v35 = vsub.f32 %v3092_v30, %v2149_v8  ;;  %v2135_v36 = vpop.f32.mrb[35].mxu0  ;;  %v2577_v37 = vsub.f32 %v3113_v32, %v2571_v26  ;;  %v2411_v38 = vpop.f32.mrb[37].mxu1 }
 0x1f6   : > { %v2154_v39 = vsub.f32 %v2135_v36, %v2148_v10  ;;  %v2576_v40 = vsub.f32 %v2411_v38, %v2570_v31  ;;  %v2172_v44 = vadd.f32 0.0009, %v2170_v34 }
 0x1f7   : > { %v2175_v42 = vmul.f32 %v2173_v33, %v2169_v28  ;;  %v2161_v45 = vmul.f32 2.0, %v2155_v35 }
 0x1f8   : > { %v2160_v48 = vmul.f32 2.0, %v2154_v39  ;;  %v3106_v49 = vpop.f32.mrb[36].mxu0  ;;  %v2174_v50 = vmul.f32 %v2172_v44, %v2168_v41 }
 0x1f9   : > { %3244 = vrcp.f32 %v2175_v42  ;;  %v2163_v51 = vadd.f32 0.0009, %v2161_v45  ;;  %v2573_v52 = vmul.f32 %v3106_v49, %v3106_v49  ;;  %v2336_v54 = vpop.f32.mrb[37].mxu0  ;;  %v2575_v43 = vmul.f32 %v3106_v49, %v3099_v18 }
 0x1fa   : > { %v2162_v55 = vadd.f32 0.0009, %v2160_v48  ;;  %v2572_v56 = vmul.f32 %v2336_v54, %v2336_v54  ;;  %v2574_v57 = vmul.f32 %v2336_v54, %v2261_v22  ;;  %v3127_v58 = vpop.f32.mrb[38].mxu1  ;;  %3246 = vrcp.f32 %v2174_v50 }
 0x1fb   : > { %v3241_v59 = vpop.eup %3240  ;;  %v2165_v60 = vmul.f32 %v2163_v51, %v2159_v46  ;;  %v2593_v53 = vadd.f32 %v2573_v52, %v2571_v26  ;;  %v2561_v61 = vpop.f32.mrb[39].mxu1  ;;  %v2583_v8 = vmul.f32 2.0, %v2575_v43  ;;  %v2581_v11 = vsub.f32 %v3127_v58, %v2575_v43 }
 0x1fc   : > { %v3243_v62 = vpop.eup %3242  ;;  %v2164_v63 = vmul.f32 %v2162_v55, %v2158_v47  ;;  %v2592_v0 = vadd.f32 %v2572_v56, %v2570_v31  ;;  %v3120_v1 = vpop.f32.mrb[38].mxu0  ;;  %v1753_v5 = vmul.f32 %v3241_v59, %v3506_v2  ;;  %v2582_v13 = vmul.f32 2.0, %v2574_v57 }
 0x1fd   : > { %v2579_v3 = vsub.f32 %v3120_v1, %v2573_v52  ;;  %v2486_v4 = vpop.f32.mrb[39].mxu0  ;;  %v1751_v6 = vmul.f32 %v3243_v62, %v1738_v12  ;;  %v2580_v15 = vsub.f32 %v2561_v61, %v2574_v57  ;;  %v2595_v16 = vadd.f32 0.0001, %v2593_v53 }
 0x1fe   : > { %v2578_v7 = vsub.f32 %v2486_v4, %v2572_v56  ;;  %v1757_v10 = vsel %vm241_vm0, %v1753_v5, 0.0  ;;  %v2587_v18 = vmul.f32 2.0, %v2581_v11  ;;  %v2594_v19 = vadd.f32 0.0001, %v2592_v0 }
 0x1ff   : > { %v2597_v9 = vadd.f32 %v2579_v3, %v2577_v37  ;;  %1758 = vadd.xlane.f32.xlu1 %v1757_v10  ;;  %v2586_v21 = vmul.f32 2.0, %v2580_v15  ;;  %v2585_v23 = vadd.f32 0.0001, %v2583_v8  ;;  %v1754_v12 = vsel %vm241_vm0, %v1751_v6, 0.0 }
 0x200   : > { %v2596_v14 = vadd.f32 %v2578_v7, %v2576_v40  ;;  %v2589_v24 = vadd.f32 0.0009, %v2587_v18  ;;  %v2584_v25 = vadd.f32 0.0001, %v2582_v13 }
 0x201   : > { %v2599_v17 = vadd.f32 0.0009, %v2597_v9  ;;  %v2588_v27 = vadd.f32 0.0009, %v2586_v21 }
 0x202   : > { %v2598_v20 = vadd.f32 0.0009, %v2596_v14  ;;  %v2591_v30 = vmul.f32 %v2589_v24, %v2585_v23 }
 0x203   : > { %v3245_v22 = vpop.eup %3244  ;;  %v2601_v2 = vmul.f32 %v2599_v17, %v2595_v16  ;;  %1755 = vadd.xlane.f32.xlu1 %v1754_v12  ;;  %v2590_v31 = vmul.f32 %v2588_v27, %v2584_v25 }
 0x204   : > { %v2600_v26 = vmul.f32 %v2598_v20, %v2594_v19  ;;  %v2179_v28 = vmul.f32 %v3245_v22, %v2165_v60  ;;  %v3247_v29 = vpop.eup %3246 }
 0x205   : > { %3248 = vrcp.f32 %v2601_v2  ;;  %v2177_v33 = vmul.f32 %v3247_v29, %v2164_v63 }
 0x206   : > { %3250 = vrcp.f32 %v2600_v26  ;;  %v2183_v32 = vsel %vm241_vm0, %v2179_v28, 0.0 }
 0x207   : > { %2184 = vadd.xlane.f32.xlu1 %v2183_v32  ;;  %v2180_v34 = vsel %vm241_vm0, %v2177_v33, 0.0 }
 0x208   : > { %2181 = vadd.xlane.f32.xlu0 %v2180_v34 }
 0x20f   : > { %v3249_v35 = vpop.eup %3248 }
 0x210   : > { %v3251_v36 = vpop.eup %3250  ;;  %v2605_v37 = vmul.f32 %v3249_v35, %v2591_v30 }
 0x211   : > { %v2603_v38 = vmul.f32 %v3251_v36, %v2590_v31 }
 0x212   : > { %v2609_v39 = vsel %vm241_vm0, %v2605_v37, 0.0 }
 0x213   : > { %2610 = vadd.xlane.f32.xlu1 %v2609_v39  ;;  %v2606_v40 = vsel %vm241_vm0, %v2603_v38, 0.0 }
 0x214   : > { %2607 = vadd.xlane.f32.xlu0 %v2606_v40 }
 0x27a   : > { %v1333_v41 = vpop.xlane.xlu0 %1332 }
 0x27e   : > { %v1330_v42 = vpop.xlane.xlu0 %1329 }
 0x27f   : > { %v1334_v44 = vadd.f32 %v1333_v41, %v1330_v42 }
 0x281   : > { %v1335_v45 = vrot.slane %v1334_v44, 4 }
 0x283   : > { %v1336_v46 = vadd.f32 %v1335_v45, %v1334_v44 }
 0x285   : > { %v1337_v47 = vrot.slane %v1336_v46, 2 }
 0x287   : > { %v1338_v48 = vadd.f32 %v1337_v47, %v1336_v46 }
 0x289   : > { %v1339_v49 = vrot.slane %v1338_v48, 1 }
 0x28b   : > { %v1340_v50 = vadd.f32 %v1339_v49, %v1338_v48 }
 0x28c   : > { %v1759_v51 = vpop.xlane.xlu1 %1758 }
 0x28d   : > { %1342 = vst.msk [vmem:[%s3521_s10] sm:$0x1] %vm1341_vm1, %v1340_v50 }
 0x290   : > { %v1756_v52 = vpop.xlane.xlu1 %1755 }
 0x291   : > { %v1760_v54 = vadd.f32 %v1759_v51, %v1756_v52 }
 0x293   : > { %v1761_v55 = vrot.slane %v1760_v54, 4 }
 0x294   : > { %v2185_v43 = vpop.xlane.xlu1 %2184 }
 0x295   : > { %v1762_v56 = vadd.f32 %v1761_v55, %v1760_v54  ;;  %v2182_v57 = vpop.xlane.xlu0 %2181 }
 0x296   : > { %v2186_v58 = vadd.f32 %v2185_v43, %v2182_v57 }
 0x297   : > { %v1763_v59 = vrot.slane %v1762_v56, 2 }
 0x298   : > { %v2187_v60 = vrot.slane %v2186_v58, 4 }
 0x299   : > { %v1764_v53 = vadd.f32 %v1763_v59, %v1762_v56 }
 0x29a   : > { %v2188_v61 = vadd.f32 %v2187_v60, %v2186_v58 }
 0x29b   : > { %v1765_v62 = vrot.slane %v1764_v53, 1 }
 0x29c   : > { %v2189_v63 = vrot.slane %v2188_v61, 2 }
 0x29d   : > { %v1766_v0 = vadd.f32 %v1765_v62, %v1764_v53 }
 0x29e   : > { %v2190_v1 = vadd.f32 %v2189_v63, %v2188_v61 }
 0x29f   : > { %2753 = vst.msk [vmem:[%s3521_s10 + $0x1] sm:$0x1] %vm1341_vm1, %v1766_v0 }
 0x2a0   : > { %v2611_v3 = vpop.xlane.xlu1 %2610  ;;  %v2191_v4 = vrot.slane %v2190_v1, 1 }
 0x2a1   : > { %v2608_v5 = vpop.xlane.xlu0 %2607 }
 0x2a2   : > { %v2612_v6 = vadd.f32 %v2611_v3, %v2608_v5  ;;  %v2192_v7 = vadd.f32 %v2191_v4, %v2190_v1 }
 0x2a4   : > { %v2613_v8 = vrot.slane %v2612_v6, 4  ;;  %2764 = vst.msk [vmem:[%s3521_s10 + $0x2] sm:$0x1] %vm1341_vm1, %v2192_v7 }
 0x2a6   : > { %v2614_v9 = vadd.f32 %v2613_v8, %v2612_v6 }
 0x2a8   : > { %v2615_v10 = vrot.slane %v2614_v9, 2 }
 0x2aa   : > { %v2616_v11 = vadd.f32 %v2615_v10, %v2614_v9 }
 0x2ac   : > { %v2617_v13 = vrot.slane %v2616_v11, 1 }
 0x2ae   : > { %v2618_v14 = vadd.f32 %v2617_v13, %v2616_v11 }
 0x2b0   : > { %2775 = vst.msk [vmem:[%s3521_s10 + $0x3] sm:$0x1] %vm1341_vm1, %v2618_v14 }
 0x2b1 PF: > { %s14_s15 = sadd.s32 1, %s3258_s15  }
 0x2b2   : > { %p11_p5 = scmp.ge.s32.totalorder %s14_s15, 4  }
 0x2b4   :  { %13 = sbr.rel (!%p11_p5) target bundleno = 1 (0x1), region = 72 }

</bundles_post_ra>
